<compile_context>
chip_gen: v7x
topology: tpu7x:2x2x1
jax: 0.10.0
libtpu: 0.0.40
codegen_flags: <defaults>
</compile_context>

<pallas_src>
import functools

import jax
import jax.numpy as jnp
from jax import lax
from jax.experimental import pallas as pl
from jax.experimental.pallas import tpu as pltpu

LANE = 128
SUBLANE = 8
ROW_TILE = 128   # im2col rows per grid step (keeps live vregs <= ~16)


def _round_up(x, m):
    return (x + m - 1) // m * m


# ----------------------------------------------------------------------------
# Kernels
# ----------------------------------------------------------------------------
def _conv_relu_mean_softmax_kernel(patches_ref, sel_ref, w_ref, out_ref,
                                   acc_ref, *, cout):
    """One row-chunk of conv(as matmul, bias folded) + ReLU + per-image mean;
    channel softmax in the final grid step.

    patches_ref : (tile, K_pad)   im2col rows for this chunk (ones col at K)
    sel_ref     : (N_pad, tile)   per-image mean selector (1/HW entries)
    w_ref       : (K_pad, C_pad)  flattened conv weight (+bias row), zero padded
    out_ref     : (N_pad, C_pad)  softmax over the first `cout` channels
    acc_ref     : (N_pad, C_pad)  f32 running per-image mean accumulator
    """
    step = pl.program_id(0)

    @pl.when(step == 0)
    def _init():
        acc_ref[...] = jnp.zeros_like(acc_ref)

    # Chunked MXU matmul; bias folded via the ones column -> epilogue is ReLU.
    y = jnp.maximum(
        jnp.dot(patches_ref[...], w_ref[...], preferred_element_type=jnp.float32),
        0.0)
    # Per-image partial spatial mean as a second small MXU matmul (no cross-
    # sublane VPU/XLU reductions, no per-image Python unrolling).
    acc_ref[...] += jnp.dot(sel_ref[...], y, preferred_element_type=jnp.float32)

    @pl.when(step == pl.num_programs(0) - 1)
    def _finalize():
        m = acc_ref[...]
        lane = lax.broadcasted_iota(jnp.int32, m.shape, 1)
        mneg = jnp.where(lane < cout, m, -jnp.inf)
        mx = jnp.max(mneg, axis=1, keepdims=True)
        e = jnp.exp(mneg - mx)                  # exp(-inf)=0 masks padded lanes
        denom = jnp.sum(e, axis=1, keepdims=True)
        r = pl.reciprocal(denom, approx=True)   # EUP slot
        r = r * (2.0 - denom * r)               # one Newton step -> ~f32 accuracy
        out_ref[...] = e * r


def _linear_tanh_kernel(x_ref, w_ref, out_ref):
    """Padded Linear (+folded bias) + tanh.  x:(Np,Dip), w:(Dip,Dop)."""
    out_ref[...] = jnp.tanh(
        jnp.dot(x_ref[...], w_ref[...], preferred_element_type=jnp.float32))


# ----------------------------------------------------------------------------
# Wrappers
# ----------------------------------------------------------------------------
def _im2col_nhwc(x_nchw, kh, kw, pad, stride):
    """NCHW input -> (N, Ho*Wo, kh*kw*Cin) patches in (i, j, c) row order.

    The layout change (NCHW -> NHWC) happens on the small raw input; the
    9x-expanded slab is built directly in its final order, so no transpose of
    the inflated array is needed (keeps the producer chain cheaply fusable).
    """
    N, C, H, W = x_nchw.shape
    x = jnp.transpose(x_nchw, (0, 2, 3, 1))                       # NHWC (tiny)
    xpad = jnp.pad(x, ((0, 0), (pad, pad), (pad, pad), (0, 0)))
    Ho = (H + 2 * pad - kh) // stride + 1
    Wo = (W + 2 * pad - kw) // stride + 1
    cols = []
    for i in range(kh):
        for j in range(kw):
            cols.append(
                xpad[:, i:i + stride * Ho:stride, j:j + stride * Wo:stride, :])
    patches = jnp.concatenate(cols, axis=-1)                      # (N,Ho,Wo,9C)
    return patches.reshape(N, Ho * Wo, kh * kw * C), Ho, Wo


@functools.partial(jax.jit,
                   static_argnames=("pad", "stride", "use_bf16_operands"))
def conv_layer_forward(x_nchw, w_oihw, b, *, pad=1, stride=1,
                       use_bf16_operands=False):
    """Layer(lin='conv', activ='ReLU', pooling='max') forward -> (N, Cout)."""
    Cout, Cin, kh, kw = w_oihw.shape
    patches, _, _ = _im2col_nhwc(x_nchw, kh, kw, pad, stride)
    N, HW, K = patches.shape
    rows = N * HW

    K_aug = K + 1                        # ones column folds the conv bias in
    K_pad = _round_up(K_aug, LANE)       # lane-dense contraction
    C_pad = _round_up(Cout, LANE)        # lane-dense output / stores
    N_pad = _round_up(N, SUBLANE)        # sublane-dense accumulator rows
    tile = min(ROW_TILE, _round_up(rows, SUBLANE))
    rows_pad = _round_up(rows, tile)

    # LHS: (rows_pad, K_pad), ones column at index K (bias folding), no scatters.
    ones_col = jnp.ones((rows, 1), patches.dtype)
    patches2d = jnp.concatenate([patches.reshape(rows, K), ones_col], axis=1)
    patches2d = jnp.pad(patches2d, ((0, rows_pad - rows), (0, K_pad - K_aug)))

    # RHS: flattened weight in matching (i, j, c) row order; bias in row K.
    w_mat = jnp.transpose(w_oihw, (2, 3, 1, 0)).reshape(K, Cout)
    w_mat = jnp.concatenate([w_mat, b.reshape(1, Cout)], axis=0)
    w_mat = jnp.pad(w_mat, ((0, K_pad - K_aug), (0, C_pad - Cout)))

    # Per-image mean selector: sel[p, g] = 1/HW iff row g belongs to image p.
    row_ids = jnp.arange(rows_pad, dtype=jnp.int32)
    img_of_row = row_ids // HW
    sel = (img_of_row[None, :] == jnp.arange(N_pad, dtype=jnp.int32)[:, None])
    sel = jnp.where(row_ids[None, :] < rows,
                    sel.astype(jnp.float32) * (1.0 / HW), 0.0)

    if use_bf16_operands:
        # Bandwidth lever for v6e/v7x at larger H*W; accumulation stays f32.
        patches2d = patches2d.astype(jnp.bfloat16)
        w_mat = w_mat.astype(jnp.bfloat16)
    itemsize = 2 if use_bf16_operands else 4

    num_chunks = rows_pad // tile
    out_pad = pl.pallas_call(
        functools.partial(_conv_relu_mean_softmax_kernel, cout=Cout),
        out_shape=jax.ShapeDtypeStruct((N_pad, C_pad), jnp.float32),
        grid_spec=pltpu.PrefetchScalarGridSpec(
            num_scalar_prefetch=0,
            grid=(num_chunks,),
            in_specs=[
                pl.BlockSpec((tile, K_pad), lambda r: (r, 0)),
                pl.BlockSpec((N_pad, tile), lambda r: (0, r)),
                pl.BlockSpec((K_pad, C_pad), lambda r: (0, 0)),
            ],
            out_specs=pl.BlockSpec((N_pad, C_pad), lambda r: (0, 0)),
            scratch_shapes=[pltpu.VMEM((N_pad, C_pad), jnp.float32)],
        ),
        compiler_params=pltpu.CompilerParams(
            # Accumulator is resident across the row-chunk axis.
            dimension_semantics=("arbitrary",),
            # Let XLA fuse the transpose-free im2col / selector producers into
            # the custom call's operands (avoids extra HBM intermediates).
            allow_input_fusion=[True, True, False]),
        cost_estimate=pl.CostEstimate(
            # Real (unpadded) work.
            flops=2 * rows * K_aug * Cout + 2 * rows * Cout,
            transcendentals=N * Cout,
            bytes_accessed=(itemsize * (patches2d.size + w_mat.size)
                            + 4 * (sel.size + N_pad * C_pad))),
    )(patches2d, sel, w_mat)
    return out_pad[:N, :Cout]


@jax.jit
def linear_layer_forward(x, w, b):
    """Layer(lin='full', activ='tanh') forward.  x: (N, Din) -> (N, Dout)."""
    N, Din = x.shape
    Dout = w.shape[1]

    N_pad = _round_up(max(N, 1), SUBLANE)     # sublane-dense rows
    Din_pad = _round_up(Din + 1, LANE)        # +1 ones column folds the bias in
    Dout_pad = _round_up(Dout, LANE)          # lane-dense output

    ones_col = jnp.ones((N, 1), x.dtype)
    x_pad = jnp.pad(jnp.concatenate([x, ones_col], axis=1),
                    ((0, N_pad - N), (0, Din_pad - (Din + 1))))
    w_pad = jnp.pad(jnp.concatenate([w, b.reshape(1, Dout)], axis=0),
                    ((0, Din_pad - (Din + 1)), (0, Dout_pad - Dout)))

    out_pad = pl.pallas_call(
        _linear_tanh_kernel,
        out_shape=jax.ShapeDtypeStruct((N_pad, Dout_pad), jnp.float32),
        in_specs=[
            pl.BlockSpec(memory_space=pltpu.MemorySpace.VMEM),
            pl.BlockSpec(memory_space=pltpu.MemorySpace.VMEM),
        ],
        out_specs=pl.BlockSpec(memory_space=pltpu.MemorySpace.VMEM),
        compiler_params=pltpu.CompilerParams(
            allow_input_fusion=[True, False]),
        cost_estimate=pl.CostEstimate(
            flops=2 * N * (Din + 1) * Dout,
            transcendentals=N * Dout,
            bytes_accessed=4 * (N_pad * Din_pad + Din_pad * Dout_pad
                                + N_pad * Dout_pad)),
    )(x_pad, w_pad)
    return out_pad[:N, :Dout]


# ----------------------------------------------------------------------------
# Main
# ----------------------------------------------------------------------------
if __name__ == "__main__":
    key = jax.random.PRNGKey(0)
    k1, k2, k3, k4, k5, k6 = jax.random.split(key, 6)

    # ---- conv config:  Layer(4, 8, activ='ReLU', lin='conv', kernel_size=3,
    #                          padding=1, stride=1, pooling='max')
    N, Cin, H, W = 2, 4, 16, 16
    Cout, kh, kw = 8, 3, 3
    x = jax.random.normal(k1, (N, Cin, H, W), dtype=jnp.float32)
    w_conv = jax.random.normal(k2, (Cout, Cin, kh, kw), dtype=jnp.float32) * 0.1
    b_conv = jax.random.normal(k3, (Cout,), dtype=jnp.float32) * 0.1

    out_conv = jax.block_until_ready(
        conv_layer_forward(x, w_conv, b_conv, pad=1, stride=1))

    # pure-JAX reference for the conv config
    ref = jax.lax.conv_general_dilated(
        x, w_conv, window_strides=(1, 1), padding=((1, 1), (1, 1)),
        dimension_numbers=("NCHW", "OIHW", "NCHW"))
    ref = jnp.maximum(ref + b_conv[None, :, None, None], 0.0)
    ref = ref.reshape(N, Cout, -1).mean(axis=2)
    ref = jax.nn.softmax(ref, axis=1)
    assert out_conv.shape == (N, Cout)
    # Tolerance slightly loosened vs exact-divide: softmax denominator uses the
    # EUP approximate reciprocal (+1 Newton step).
    assert jnp.allclose(out_conv, ref, atol=1e-4, rtol=1e-3), (
        "conv path mismatch")

    # ---- full config:  Layer(32, 64, activ='tanh', lin='full')
    Din, Dout = 32, 64
    xf = jax.random.normal(k4, (N, Din), dtype=jnp.float32)
    w_lin = jax.random.normal(k5, (Din, Dout), dtype=jnp.float32) * 0.1
    b_lin = jax.random.normal(k6, (Dout,), dtype=jnp.float32) * 0.1

    out_lin = jax.block_until_ready(linear_layer_forward(xf, w_lin, b_lin))

    ref_lin = jnp.tanh(xf @ w_lin + b_lin[None, :])
    assert out_lin.shape == (N, Dout)
    assert jnp.allclose(out_lin, ref_lin, atol=1e-5, rtol=1e-4), (
        "linear path mismatch")

    print("KERNEL_OK")
</pallas_src>

<mosaic_0001>
module attributes {stable_mosaic.version = 11 : i64} {
  func.func @_conv_relu_mean_softmax_kernel(%arg0: i32, %arg1: memref<128x128xf32, #tpu.memory_space<vmem>>, %arg2: memref<8x128xf32, #tpu.memory_space<vmem>>, %arg3: memref<128x128xf32, #tpu.memory_space<vmem>>, %arg4: memref<8x128xf32, #tpu.memory_space<vmem>>, %arg5: memref<8x128xf32, #tpu.memory_space<vmem>>) attributes {dimension_semantics = [#tpu.dimension_semantics<arbitrary>], iteration_bounds = array<i64: 4>, scalar_prefetch = 0 : i64, scratch_operands = 1 : i64, tpu.core_type = #tpu.core_type<tc>, window_params = [{transform_indices = @transform_0, window_bounds = array<i64: 128, 128>}, {transform_indices = @transform_1, window_bounds = array<i64: 8, 128>}, {pipeline_mode = #tpu.pipeline_mode<synchronous>, transform_indices = @transform_2, window_bounds = array<i64: 128, 128>}, {pipeline_mode = #tpu.pipeline_mode<synchronous>, transform_indices = @transform_3, window_bounds = array<i64: 8, 128>}]} {
    %c0_i32 = arith.constant 0 : i32
    %0 = arith.cmpi eq, %arg0, %c0_i32 : i32
    %1 = arith.extui %0 : i1 to i32
    %c0_i32_0 = arith.constant 0 : i32
    %2 = arith.cmpi ne, %1, %c0_i32_0 : i32
    scf.if %2 {
      %cst_13 = arith.constant 0.000000e+00 : f32
      %16 = vector.broadcast %cst_13 : f32 to vector<8x128xf32>
      %c0_14 = arith.constant 0 : index
      %c0_15 = arith.constant 0 : index
      %17 = vector.load %arg5[%c0_14, %c0_15] : memref<8x128xf32, #tpu.memory_space<vmem>>, vector<8x128xf32>
      tpu.vector_store %arg5[%c0_14, %c0_15], %16 {strides = array<i32>} : memref<8x128xf32, #tpu.memory_space<vmem>>, vector<8x128xf32>,
    } else {
    }
    %c0 = arith.constant 0 : index
    %c0_1 = arith.constant 0 : index
    %3 = vector.load %arg1[%c0, %c0_1] : memref<128x128xf32, #tpu.memory_space<vmem>>, vector<128x128xf32>
    %c0_2 = arith.constant 0 : index
    %c0_3 = arith.constant 0 : index
    %4 = vector.load %arg3[%c0_2, %c0_3] : memref<128x128xf32, #tpu.memory_space<vmem>>, vector<128x128xf32>
    %cst = arith.constant dense<0.000000e+00> : vector<128x128xf32>
    %5 = tpu.matmul %3, %4, %cst {dimension_numbers = #tpu.dot_dimension_numbers<[1], [0], [0], [1], [0, 0, 1, 1], [], []>} : vector<128x128xf32>, vector<128x128xf32>, vector<128x128xf32> -> vector<128x128xf32>
    %cst_4 = arith.constant 0.000000e+00 : f32
    %6 = vector.broadcast %cst_4 : f32 to vector<128x128xf32>
    %7 = arith.maximumf %5, %6 : vector<128x128xf32>
    %c0_5 = arith.constant 0 : index
    %c0_6 = arith.constant 0 : index
    %8 = vector.load %arg5[%c0_5, %c0_6] : memref<8x128xf32, #tpu.memory_space<vmem>>, vector<8x128xf32>
    %c0_7 = arith.constant 0 : index
    %c0_8 = arith.constant 0 : index
    %9 = vector.load %arg2[%c0_7, %c0_8] : memref<8x128xf32, #tpu.memory_space<vmem>>, vector<8x128xf32>
    %cst_9 = arith.constant dense<0.000000e+00> : vector<8x128xf32>
    %10 = tpu.matmul %9, %7, %cst_9 {dimension_numbers = #tpu.dot_dimension_numbers<[1], [0], [0], [1], [0, 0, 1, 1], [], []>} : vector<8x128xf32>, vector<128x128xf32>, vector<8x128xf32> -> vector<8x128xf32>
    %11 = arith.addf %8, %10 : vector<8x128xf32>
    %c0_10 = arith.constant 0 : index
    %c0_11 = arith.constant 0 : index
    %12 = vector.load %arg5[%c0_10, %c0_11] : memref<8x128xf32, #tpu.memory_space<vmem>>, vector<8x128xf32>
    tpu.vector_store %arg5[%c0_10, %c0_11], %11 {strides = array<i32>} : memref<8x128xf32, #tpu.memory_space<vmem>>, vector<8x128xf32>,
    %c3_i32 = arith.constant 3 : i32
    %13 = arith.cmpi eq, %arg0, %c3_i32 : i32
    %14 = arith.extui %13 : i1 to i32
    %c0_i32_12 = arith.constant 0 : i32
    %15 = arith.cmpi ne, %14, %c0_i32_12 : i32
    scf.if %15 {
      %c0_13 = arith.constant 0 : index
      %c0_14 = arith.constant 0 : index
      %16 = vector.load %arg5[%c0_13, %c0_14] : memref<8x128xf32, #tpu.memory_space<vmem>>, vector<8x128xf32>
      %17 = tpu.iota {dimensions = array<i32: 1>} : vector<8x128xi32>
      %c8_i32 = arith.constant 8 : i32
      %18 = vector.broadcast %c8_i32 : i32 to vector<8x128xi32>
      %19 = arith.cmpi slt, %17, %18 : vector<8x128xi32>
      %cst_15 = arith.constant 0xFF800000 : f32
      %20 = vector.broadcast %cst_15 : f32 to vector<8x128xf32>
      %21 = arith.select %19, %16, %20 : vector<8x128xi1>, vector<8x128xf32>
      %cst_16 = arith.constant dense<0xFF800000> : vector<8xf32>
      %22 = vector.multi_reduction <maximumf>, %21, %cst_16 [1] : vector<8x128xf32> to vector<8xf32>
      %23 = vector.shape_cast %22 : vector<8xf32> to vector<8x1xf32>
      %24 = vector.broadcast %23 : vector<8x1xf32> to vector<8x128xf32>
      %25 = arith.subf %21, %24 : vector<8x128xf32>
      %26 = math.exp %25 : vector<8x128xf32>
      %cst_17 = arith.constant dense<0.000000e+00> : vector<8xf32>
      %27 = vector.multi_reduction <add>, %26, %cst_17 [1] : vector<8x128xf32> to vector<8xf32>
      %28 = vector.shape_cast %27 : vector<8xf32> to vector<8x1xf32>
      %29 = tpu.reciprocal %28 {approx = true} : vector<8x1xf32> -> vector<8x1xf32>
      %30 = arith.mulf %28, %29 : vector<8x1xf32>
      %cst_18 = arith.constant 2.000000e+00 : f32
      %31 = vector.broadcast %cst_18 : f32 to vector<8x1xf32>
      %32 = arith.subf %31, %30 : vector<8x1xf32>
      %33 = arith.mulf %29, %32 : vector<8x1xf32>
      %34 = vector.broadcast %33 : vector<8x1xf32> to vector<8x128xf32>
      %35 = arith.mulf %26, %34 : vector<8x128xf32>
      %c0_19 = arith.constant 0 : index
      %c0_20 = arith.constant 0 : index
      %36 = vector.load %arg4[%c0_19, %c0_20] : memref<8x128xf32, #tpu.memory_space<vmem>>, vector<8x128xf32>
      tpu.vector_store %arg4[%c0_19, %c0_20], %35 {strides = array<i32>} : memref<8x128xf32, #tpu.memory_space<vmem>>, vector<8x128xf32>,
    } else {
    }
    return
  }
  func.func @transform_0(%arg0: i32) -> (i32, i32) {
    %c0_i32 = arith.constant 0 : i32
    %c0_i32_0 = arith.constant 0 : i32
    return %arg0, %c0_i32 : i32, i32
  }
  func.func @transform_1(%arg0: i32) -> (i32, i32) {
    %c0_i32 = arith.constant 0 : i32
    %c0_i32_0 = arith.constant 0 : i32
    return %c0_i32, %arg0 : i32, i32
  }
  func.func @transform_2(%arg0: i32) -> (i32, i32) {
    %c0_i32 = arith.constant 0 : i32
    %c0_i32_0 = arith.constant 0 : i32
    %c0_i32_1 = arith.constant 0 : i32
    return %c0_i32, %c0_i32_0 : i32, i32
  }
  func.func @transform_3(%arg0: i32) -> (i32, i32) {
    %c0_i32 = arith.constant 0 : i32
    %c0_i32_0 = arith.constant 0 : i32
    %c0_i32_1 = arith.constant 0 : i32
    return %c0_i32, %c0_i32_0 : i32, i32
  }
}

</mosaic_0001>

<bundles_post_ra>
// kernel: conv_layer_forward.2
= control target key start
LH: loop header
LB: loop body
LE: loop exit
PB: predicated region body
PF: predicated region fallthrough
CT: control target
= control target key end

     0   :  { %s1360_s13 = smov 0   ;;  %s1585_s0 = inlined_call_operand.vmem [shape: f32[128,128], index: 0, kind: input, shape index: {}]   ;;  %s1586_s1 = inlined_call_operand.vmem [shape: f32[512,36], index: 1, kind: input, shape index: {}]   ;;  %s1587_s2 = inlined_call_operand.<no memory space> [shape: f32[], index: 2, kind: input, shape index: {}]   ;;  %s1588_s3 = inlined_call_operand.<no memory space> [shape: f32[], index: 3, kind: input, shape index: {}]   ;;  %s1589_s4 = inlined_call_operand.<no memory space> [shape: s32[], index: 4, kind: input, shape index: {}]   ;;  %s1590_s5 = inlined_call_operand.vmem [shape: s32[512], index: 5, kind: input, shape index: {}]   ;;  %s1591_s6 = inlined_call_operand.<no memory space> [shape: f32[], index: 6, kind: input, shape index: {}]   ;;  %s1592_s7 = inlined_call_operand.vmem [shape: pred[512], index: 7, kind: input, shape index: {}]   ;;  %s1593_s8 = inlined_call_operand.vmem [shape: f32[8,128], index: 8, kind: output, shape index: {}]  }
   0x1   :  { %v1347_v0 = vstv %s1587_s2  ;;  %v1352_v1 = vstv %s1588_s3  ;;  %v15_v2 = vstv %s1589_s4  ;;  %v17_v3 = vstv %s1591_s6 }
   0x2 LB: > { %s1366_s2 = sadd.s32 4294967295, %s1293_s13   ;;  %p1044_p0 = scmp.ge.s32.totalorder %s1293_s13, 1  ;;  %s1293_s13 = sphi %s1360_s13, %s23_s13  }
   0x3   : > { %p208_p1 = scmp.lt.s32.totalorder %s1293_s13, 5 }
   0x5   : > { %p209_p2 = pnand %p1044_p0, %p208_p1 }
   0x7   : > { %212 = sbr.rel (%p209_p2) target bundleno = 863 (0x35f), region = 36 }
   0xe   : > { %s1045_s3 = sshll.u32 %s1366_s2, 4  ;;  %v276_v4 = vlaneseq  ;;  %s1062_s14 = sshll.u32 %s1366_s2, 7 }
   0xf   : > { %p245_p3 = scmp.lt.s32.totalorder %s1045_s3, 63  ;;  %s643_s15 = sshrl.u32 %s1062_s14, 9 }
  0x10   : > { %v1372_v5 = vand.u32 127, %v276_v4  ;;  %p1064_p4 = scmp.gt.s32.totalorder %s643_s15, 0  ;;  %s646_s16 = sand.u32 511, %s1062_s14   ;;  %v1409_v16 = vshrl.u32 %v276_v4, 7 }
  0x11   : > { %s1597_s3 = smov (!%p245_p3, %s1045_s3), 63  ;;  %s1395_s24 = sshrl.u32 %s646_s16, 7 }
  0x12   : > { %s1599_s15 = smov (%p1064_p4, %s643_s15), 0  ;;  %s1046_s17 = sshll.u32 %s1597_s3, 3  ;;  %vm279_vm0 = vcmp.lt.s32.totalorder %v1372_v5, 36  ;;  %vm1387_vm1 = vcmp.lt.s32.totalorder %v1372_v5, %v15_v2 }
  0x13   : > { %s1380_s20 = scalar_lea.vmem %s1586_s1, %s1046_s17  ;;  %s1065_s23 = sshll.u32 %s1599_s15, 2 }
  0x14   : > { %v275_v7 = vld [vmem:[%s1380_s20] sm:$0xff]  ;;  %v1047_v8 = vld [vmem:[%s1380_s20 + $0x8] sm:$0xff]  ;;  %v1048_v9 = vld [vmem:[%s1380_s20 + $0x10] sm:$0xff]  ;;  %s1429_s27 = scalar_lea.vmem %s1590_s5, %s1065_s23  ;;  %s660_s30 = scalar_lea.vmem %s1592_s7, %s1599_s15 }
  0x15   : > { %v280_v10 = vsel %vm279_vm0, %v275_v7, %v1347_v0  ;;  %v302_v11 = vsel %vm279_vm0, %v1047_v8, %v1347_v0  ;;  %v325_v12 = vsel %vm279_vm0, %v1048_v9, %v1347_v0  ;;  %v1049_v13 = vld [vmem:[%s1380_s20 + $0x18] sm:$0xff]  ;;  %v1050_v14 = vld [vmem:[%s1380_s20 + $0x20] sm:$0xff]  ;;  %v1051_v15 = vld [vmem:[%s1380_s20 + $0x28] sm:$0xff]  ;;  %s661_s9 = sshrl.u32 %s1395_s24, 2  ;;  %s652_s10 = scalar_lea.vmem %s1429_s27, %s1395_s24 }
  0x16   : > { %v292_v17 = vsel %vm1387_vm1, %v280_v10, %v1352_v1  ;;  %v314_v18 = vsel %vm1387_vm1, %v302_v11, %v1352_v1  ;;  %v337_v19 = vsel %vm1387_vm1, %v325_v12, %v1352_v1  ;;  %v348_v20 = vsel %vm279_vm0, %v1049_v13, %v1347_v0  ;;  %v1052_v21 = vld [vmem:[%s1380_s20 + $0x30] sm:$0xff]  ;;  %v1053_v22 = vld [vmem:[%s1380_s20 + $0x38] sm:$0xff]  ;;  %v1054_v23 = vld [vmem:[%s1380_s20 + $0x40] sm:$0xff]  ;;  %s662_s11 = sand.u32 3, %s1395_s24   ;;  %s663_s12 = scalar_lea.vmem %s660_s30, %s661_s9 }
  0x17   : > { %295 = vst [vmem:[#allocation8] sm:$0xff] %v292_v17  ;;  %318 = vst [vmem:[#allocation8 + $0x8] sm:$0xff] %v314_v18  ;;  %v360_v24 = vsel %vm1387_vm1, %v348_v20, %v1352_v1  ;;  %v371_v25 = vsel %vm279_vm0, %v1050_v14, %v1347_v0  ;;  %v394_v26 = vsel %vm279_vm0, %v1051_v15, %v1347_v0  ;;  %v1055_v28 = vld [vmem:[%s1380_s20 + $0x48] sm:$0xff]  ;;  %v1056_v29 = vld [vmem:[%s1380_s20 + $0x50] sm:$0xff]  ;;  %v665_v58 = vstv %s662_s11  ;;  %p1067_p5 = scmp.ne.s32.totalorder %s1366_s2, 0 }
  0x18   : > { %341 = vst [vmem:[#allocation8 + $0x10] sm:$0xff] %v337_v19  ;;  %v417_v27 = vsel %vm279_vm0, %v1052_v21, %v1347_v0  ;;  %v1057_v30 = vld [vmem:[%s1380_s20 + $0x58] sm:$0xff]  ;;  %364 = vst [vmem:[#allocation8 + $0x18] sm:$0xff] %v360_v24  ;;  %v383_v31 = vsel %vm1387_vm1, %v371_v25, %v1352_v1  ;;  %v406_v32 = vsel %vm1387_vm1, %v394_v26, %v1352_v1  ;;  %v1058_v35 = vld [vmem:[%s1380_s20 + $0x60] sm:$0xff]  ;;  %v666_v59 = vshll.u32 %v665_v58, 3 }
  0x19   : > { %v429_v33 = vsel %vm1387_vm1, %v417_v27, %v1352_v1  ;;  %v440_v34 = vsel %vm279_vm0, %v1053_v22, %v1347_v0  ;;  %v1059_v36 = vld [vmem:[%s1380_s20 + $0x68] sm:$0xff]  ;;  %v1060_v37 = vld [vmem:[%s1380_s20 + $0x70] sm:$0xff]  ;;  %387 = vst [vmem:[#allocation8 + $0x20] sm:$0xff] %v383_v31  ;;  %410 = vst [vmem:[#allocation8 + $0x28] sm:$0xff] %v406_v32  ;;  %v463_v39 = vsel %vm279_vm0, %v1054_v23, %v1347_v0  ;;  %v1295_v4 = vmov (!%p1067_p5), 0.0  }
  0x1a   : > { %433 = vst [vmem:[#allocation8 + $0x30] sm:$0xff] %v429_v33  ;;  %v452_v38 = vsel %vm1387_vm1, %v440_v34, %v1352_v1  ;;  %v486_v40 = vsel %vm279_vm0, %v1055_v28, %v1347_v0  ;;  %v509_v41 = vsel %vm279_vm0, %v1056_v29, %v1347_v0  ;;  %v1061_v42 = vld [vmem:[%s1380_s20 + $0x78] sm:$0xff]  ;;  %v475_v43 = vsel %vm1387_vm1, %v463_v39, %v1352_v1  ;;  %v653_v55 = vld [vmem:[%s652_s10] ss:$0 sm:$0xff] }
  0x1b   : > { %456 = vst [vmem:[#allocation8 + $0x38] sm:$0xff] %v452_v38  ;;  %v498_v44 = vsel %vm1387_vm1, %v486_v40, %v1352_v1  ;;  %v521_v45 = vsel %vm1387_vm1, %v509_v41, %v1352_v1  ;;  %v532_v46 = vsel %vm279_vm0, %v1057_v30, %v1347_v0  ;;  %479 = vst [vmem:[#allocation8 + $0x40] sm:$0xff] %v475_v43  ;;  %v664_v57 = vld [vmem:[%s663_s12] ss:$0 sm:$0xff] }
  0x1c   : > { %502 = vst [vmem:[#allocation8 + $0x48] sm:$0xff] %v498_v44  ;;  %525 = vst [vmem:[#allocation8 + $0x50] sm:$0xff] %v521_v45  ;;  %v544_v47 = vsel %vm1387_vm1, %v532_v46, %v1352_v1  ;;  %v555_v48 = vsel %vm279_vm0, %v1058_v35, %v1347_v0  ;;  %v578_v49 = vsel %vm279_vm0, %v1059_v36, %v1347_v0 }
  0x1d   : > { %v601_v50 = vsel %vm279_vm0, %v1060_v37, %v1347_v0  ;;  %548 = vst [vmem:[#allocation8 + $0x58] sm:$0xff] %v544_v47  ;;  %v567_v51 = vsel %vm1387_vm1, %v555_v48, %v1352_v1  ;;  %v590_v52 = vsel %vm1387_vm1, %v578_v49, %v1352_v1  ;;  %v624_v54 = vsel %vm279_vm0, %v1061_v42, %v1347_v0 }
  0x1e   : > { %v613_v53 = vsel %vm1387_vm1, %v601_v50, %v1352_v1  ;;  %571 = vst [vmem:[#allocation8 + $0x60] sm:$0xff] %v567_v51  ;;  %594 = vst [vmem:[#allocation8 + $0x68] sm:$0xff] %v590_v52  ;;  %v636_v56 = vsel %vm1387_vm1, %v624_v54, %v1352_v1  ;;  %vm675_vm2 = vcmp.eq.s32.totalorder %v653_v55, %v1409_v16 }
  0x1f   : > { %617 = vst [vmem:[#allocation8 + $0x70] sm:$0xff] %v613_v53  ;;  %640 = vst [vmem:[#allocation8 + $0x78] sm:$0xff] %v636_v56  ;;  %v667_v60 = vshra.s32 %v664_v57, %v666_v59  ;;  %v680_v62 = vsel %vm675_vm2, %v17_v3, %v1352_v1  ;;  %692 = sbr.rel (%p1067_p5) target bundleno = 38 (0x26), region = 40 }
  0x20   : > { %693 = vst [vmem:[#allocation2] sm:$0xff] (!%p1067_p5), %v1295_v4 }
  0x21   : > { %v668_v61 = vand.u32 255, %v667_v60 }
  0x23   : > { %vm684_vm3 = vcmp.ne.s32.totalorder %v668_v61, 0 }
  0x24   : > { %v685_v63 = vsel %vm684_vm3, %v680_v62, %v1352_v1 }
  0x25   : > { %688 = vst [vmem:[#allocation9] sm:$0xff] %v685_v63 }
  0x26 PF: > { %v710_v6 = vld [vmem:[%s1585_s0] sm:$0xff]  ;;  %v711_v7 = vld [vmem:[%s1585_s0 + $0x8] sm:$0xff]  ;;  %v712_v8 = vld [vmem:[%s1585_s0 + $0x10] sm:$0xff]  ;;  %v1296_v46 = vmov 0.0|0.0   ;;  %vm1297_vm4 = vmmov 0   ;;  %v1298_v47 = vmov 0.0  }
  0x27   : > { %v1215_v9 = vpack.c.bf16 %v711_v7, %v710_v6  ;;  %v713_v10 = vld [vmem:[%s1585_s0 + $0x18] sm:$0xff]  ;;  %v714_v12 = vld [vmem:[%s1585_s0 + $0x20] sm:$0xff]  ;;  %v715_v13 = vld [vmem:[%s1585_s0 + $0x28] sm:$0xff]  ;;  %1247 = vmatprep.subr.bf16.mxu1 %v1296_v46  ;;  %1212 = vmatprep.mubr.msk.f32.mxu1 %vm1297_vm4, %v1298_v47  ;;  %p1068_p6 = scmp.ne.s32.totalorder %s1366_s2, 3 }
  0x28   : > { %v1219_v11 = vpack.c.bf16 %v713_v10, %v712_v8  ;;  %v1223_v14 = vpack.c.bf16 %v715_v13, %v714_v12  ;;  %v694_v15 = vld [vmem:[#allocation8] sm:$0xff]  ;;  %v716_v16 = vld [vmem:[%s1585_s0 + $0x30] sm:$0xff]  ;;  %v717_v17 = vld [vmem:[%s1585_s0 + $0x38] sm:$0xff]  ;;  %vm968_vm5 = vcmp.lt.s32.totalorder (!%p1068_p6), %v1372_v5, 8 }
  0x29   : > { %1216 = vmatprep.subr.bf16.mxu0 %v1215_v9  ;;  %1156 = vmatprep.mubr.f32.mxu0 %v694_v15  ;;  %v1227_v18 = vpack.c.bf16 %v717_v17, %v716_v16  ;;  %v718_v19 = vld [vmem:[%s1585_s0 + $0x40] sm:$0xff]  ;;  %v719_v20 = vld [vmem:[%s1585_s0 + $0x48] sm:$0xff]  ;;  %v720_v22 = vld [vmem:[%s1585_s0 + $0x50] sm:$0xff] }
  0x2a   : > { %1218 = vmatpush3.bf16.msra.mxu0 %v1215_v9  ;;  %v1231_v21 = vpack.c.bf16 %v719_v20, %v718_v19  ;;  %v721_v23 = vld [vmem:[%s1585_s0 + $0x58] sm:$0xff]  ;;  %v722_v25 = vld [vmem:[%s1585_s0 + $0x60] sm:$0xff]  ;;  %v723_v26 = vld [vmem:[%s1585_s0 + $0x68] sm:$0xff] }
  0x2b   : > { %1220 = vmatprep.subr.bf16.mxu0 %v1219_v11  ;;  %v1235_v24 = vpack.c.bf16 %v721_v23, %v720_v22  ;;  %v1239_v27 = vpack.c.bf16 %v723_v26, %v722_v25  ;;  %v724_v28 = vld [vmem:[%s1585_s0 + $0x70] sm:$0xff]  ;;  %v725_v29 = vld [vmem:[%s1585_s0 + $0x78] sm:$0xff]  ;;  %v697_v33 = vld [vmem:[#allocation8 + $0x18] sm:$0xff] }
  0x2c   : > { %v1243_v30 = vpack.c.bf16 %v725_v29, %v724_v28  ;;  %v695_v31 = vld [vmem:[#allocation8 + $0x8] sm:$0xff]  ;;  %v696_v32 = vld [vmem:[#allocation8 + $0x10] sm:$0xff]  ;;  %v698_v34 = vld [vmem:[#allocation8 + $0x20] sm:$0xff] }
  0x2d   : > { %v699_v35 = vld [vmem:[#allocation8 + $0x28] sm:$0xff]  ;;  %v700_v36 = vld [vmem:[#allocation8 + $0x30] sm:$0xff]  ;;  %v701_v37 = vld [vmem:[#allocation8 + $0x38] sm:$0xff] }
  0x2e   : > { %1222 = vmatpush3.bf16.msra.mxu0 %v1219_v11  ;;  %v702_v38 = vld [vmem:[#allocation8 + $0x40] sm:$0xff]  ;;  %v703_v39 = vld [vmem:[#allocation8 + $0x48] sm:$0xff]  ;;  %v704_v40 = vld [vmem:[#allocation8 + $0x50] sm:$0xff] }
  0x2f   : > { %1224 = vmatprep.subr.bf16.mxu0 %v1223_v14  ;;  %v705_v41 = vld [vmem:[#allocation8 + $0x58] sm:$0xff]  ;;  %v706_v42 = vld [vmem:[#allocation8 + $0x60] sm:$0xff]  ;;  %v707_v43 = vld [vmem:[#allocation8 + $0x68] sm:$0xff] }
  0x30   : > { %v708_v44 = vld [vmem:[#allocation8 + $0x70] sm:$0xff]  ;;  %v709_v45 = vld [vmem:[#allocation8 + $0x78] sm:$0xff]  ;;  %v888_v29 = vld [vmem:[#allocation9] sm:$0xff] }
  0x32   : > { %1226 = vmatpush3.bf16.msra.mxu0 %v1223_v14 }
  0x33   : > { %1228 = vmatprep.subr.bf16.mxu0 %v1227_v18 }
  0x36   : > { %1230 = vmatpush3.bf16.msra.mxu0 %v1227_v18 }
  0x37   : > { %1232 = vmatprep.subr.bf16.mxu0 %v1231_v21 }
  0x3a   : > { %1234 = vmatpush3.bf16.msra.mxu0 %v1231_v21 }
  0x3b   : > { %1236 = vmatprep.subr.bf16.mxu0 %v1235_v24 }
  0x3e   : > { %1238 = vmatpush3.bf16.msra.mxu0 %v1235_v24 }
  0x3f   : > { %1240 = vmatprep.subr.bf16.mxu0 %v1239_v27 }
  0x42   : > { %1242 = vmatpush3.bf16.msra.mxu0 %v1239_v27 }
  0x43   : > { %1244 = vmatprep.subr.bf16.mxu0 %v1243_v30 }
  0x46   : > { %1246 = vmatpush3.bf16.msra.mxu0 %v1243_v30  ;;  %v887_v30 = vld [vmem:[#allocation2] sm:$0xff] }
  0x49   : > { %1157 = vmatmul.mubr.f32.vlgmr.msra.gmra.mrb[0].mxu0 %v695_v31 }
  0x4a   : > { %1159 = vmatprep.mubr.f32.mxu0 %v696_v32 }
  0x4d   : > { %1160 = vmatmul.mubr.f32.gmra.mrb[2].mxu0 %v697_v33 }
  0x4e   : > { %1162 = vmatprep.mubr.f32.mxu0 %v698_v34 }
  0x51   : > { %1163 = vmatmul.mubr.f32.gmra.mrb[4].mxu0 %v699_v35 }
  0x52   : > { %1165 = vmatprep.mubr.f32.mxu0 %v700_v36 }
  0x55   : > { %1166 = vmatmul.mubr.f32.gmra.mrb[6].mxu0 %v701_v37 }
  0x56   : > { %1168 = vmatprep.mubr.f32.mxu0 %v702_v38 }
  0x59   : > { %1169 = vmatmul.mubr.f32.gmra.mrb[8].mxu0 %v703_v39 }
  0x5a   : > { %1171 = vmatprep.mubr.f32.mxu0 %v704_v40 }
  0x5d   : > { %1172 = vmatmul.mubr.f32.gmra.mrb[10].mxu0 %v705_v41 }
  0x5e   : > { %1174 = vmatprep.mubr.f32.mxu0 %v706_v42 }
  0x61   : > { %1175 = vmatmul.mubr.f32.gmra.mrb[12].mxu0 %v707_v43 }
  0x62   : > { %1177 = vmatprep.mubr.f32.mxu0 %v708_v44 }
  0x65   : > { %1178 = vmatmul.mubr.f32.gmra.mrb[14].mxu0 %v709_v45 }
 0x11c   : > { %v1158_v48 = vpop.f32.mrb[0].mxu0 }
 0x11d   : > { %v872_v49 = vmax.f32 %v1158_v48, 0.0  ;;  %v792_v50 = vpop.f32.mrb[1].mxu0 }
 0x11e   : > { %v871_v51 = vmax.f32 %v792_v50, 0.0 }
 0x120   : > { %v1161_v52 = vpop.f32.mrb[2].mxu0  ;;  %v1248_v53 = vpack.c.bf16 %v872_v49, %v871_v51 }
 0x121   : > { %v874_v54 = vmax.f32 %v1161_v52, 0.0  ;;  %v802_v55 = vpop.f32.mrb[3].mxu0 }
 0x122   : > { %v873_v56 = vmax.f32 %v802_v55, 0.0  ;;  %1249 = vmatpush3.bf16.msra.mxu1 %v1248_v53 }
 0x123   : > { %1250 = vmatprep.subr.bf16.mxu1 %v1296_v46 }
 0x124   : > { %v1251_v57 = vpack.c.bf16 %v874_v54, %v873_v56  ;;  %v1164_v58 = vpop.f32.mrb[4].mxu0 }
 0x125   : > { %v876_v59 = vmax.f32 %v1164_v58, 0.0  ;;  %v812_v60 = vpop.f32.mrb[5].mxu0 }
 0x126   : > { %v875_v61 = vmax.f32 %v812_v60, 0.0  ;;  %1252 = vmatpush3.bf16.msra.mxu1 %v1251_v57 }
 0x127   : > { %1253 = vmatprep.subr.bf16.mxu1 %v1296_v46 }
 0x128   : > { %v1254_v62 = vpack.c.bf16 %v876_v59, %v875_v61  ;;  %v1167_v63 = vpop.f32.mrb[6].mxu0 }
 0x129   : > { %v878_v4 = vmax.f32 %v1167_v63, 0.0  ;;  %v822_v6 = vpop.f32.mrb[7].mxu0 }
 0x12a   : > { %v877_v7 = vmax.f32 %v822_v6, 0.0  ;;  %1255 = vmatpush3.bf16.msra.mxu1 %v1254_v62 }
 0x12b   : > { %1256 = vmatprep.subr.bf16.mxu1 %v1296_v46 }
 0x12c   : > { %v1257_v8 = vpack.c.bf16 %v878_v4, %v877_v7  ;;  %v1170_v9 = vpop.f32.mrb[8].mxu0 }
 0x12d   : > { %v880_v10 = vmax.f32 %v1170_v9, 0.0  ;;  %v832_v11 = vpop.f32.mrb[9].mxu0 }
 0x12e   : > { %v879_v12 = vmax.f32 %v832_v11, 0.0  ;;  %1258 = vmatpush3.bf16.msra.mxu1 %v1257_v8 }
 0x12f   : > { %1259 = vmatprep.subr.bf16.mxu1 %v1296_v46 }
 0x130   : > { %v1260_v13 = vpack.c.bf16 %v880_v10, %v879_v12  ;;  %v1173_v14 = vpop.f32.mrb[10].mxu0 }
 0x131   : > { %v882_v15 = vmax.f32 %v1173_v14, 0.0  ;;  %v842_v16 = vpop.f32.mrb[11].mxu0 }
 0x132   : > { %v881_v17 = vmax.f32 %v842_v16, 0.0  ;;  %1261 = vmatpush3.bf16.msra.mxu1 %v1260_v13 }
 0x133   : > { %1262 = vmatprep.subr.bf16.mxu1 %v1296_v46 }
 0x134   : > { %v1263_v18 = vpack.c.bf16 %v882_v15, %v881_v17  ;;  %v1176_v19 = vpop.f32.mrb[12].mxu0 }
 0x135   : > { %v884_v20 = vmax.f32 %v1176_v19, 0.0  ;;  %v852_v21 = vpop.f32.mrb[13].mxu0 }
 0x136   : > { %v883_v22 = vmax.f32 %v852_v21, 0.0  ;;  %1264 = vmatpush3.bf16.msra.mxu1 %v1263_v18 }
 0x137   : > { %1265 = vmatprep.subr.bf16.mxu1 %v1296_v46 }
 0x138   : > { %v1266_v23 = vpack.c.bf16 %v884_v20, %v883_v22  ;;  %v1179_v24 = vpop.f32.mrb[14].mxu0 }
 0x139   : > { %v886_v25 = vmax.f32 %v1179_v24, 0.0  ;;  %v862_v26 = vpop.f32.mrb[15].mxu0 }
 0x13a   : > { %v885_v27 = vmax.f32 %v862_v26, 0.0  ;;  %1267 = vmatpush3.bf16.msra.mxu1 %v1266_v23 }
 0x13b   : > { %1268 = vmatprep.subr.bf16.mxu1 %v1296_v46 }
 0x13c   : > { %v1269_v28 = vpack.c.bf16 %v886_v25, %v885_v27 }
 0x13e   : > { %1270 = vmatpush3.bf16.msra.mxu1 %v1269_v28 }
 0x141   : > { %1213 = vmatmul.mubr.f32.vlgmr.msra.gmra.mrb[0].mxu1 %v888_v29 }
 0x211   : > { %964 = sbr.rel (%p1068_p6) target bundleno = 863 (0x35f), region = 44 }
 0x214   : > { %v955_v31 = vpop.f32.mrb[0].mxu1 }
 0x215   : > { %v959_v32 = vadd.f32 %v955_v31, %v887_v30  ;;  %v1214_v33 = vpop.f32.mrb[1].mxu1 }
 0x217   : > { %960 = vst [vmem:[#allocation2] sm:$0xff] %v959_v32 }
 0x21e   : > { %v965_v34 = vld [vmem:[#allocation2] sm:$0xff] }
 0x21f   : > { %v969_v35 = vsel %vm968_vm5, %v965_v34, -inf }
 0x220   : > { %970 = vmax.xlane.f32.xlu0 %v969_v35 }
 0x2ad   : > { %v971_v36 = vpop.xlane.xlu0 %970 }
 0x2ae   : > { %v972_v37 = vsub.f32 %v969_v35, %v971_v36 }
 0x2b0   : > { %v973_v38 = vmul.f32 1.442695, %v972_v37 }
 0x2b2   : > { %1283 = vpow2.f32 %v973_v38 }
 0x2bc   : > { %v1284_v39 = vpop.eup %1283 }
 0x2bd   : > { %975 = vadd.xlane.f32.xlu0 %v1284_v39 }
 0x34a   : > { %v976_v40 = vpop.xlane.xlu0 %975 }
 0x34b   : > { %1285 = vrcp.f32 %v976_v40 }
 0x355   : > { %v1286_v41 = vpop.eup %1285 }
 0x356   : > { %v978_v42 = vmul.f32 %v1286_v41, %v976_v40 }
 0x358   : > { %v979_v43 = vsub.f32 2.0, %v978_v42 }
 0x35a   : > { %v980_v44 = vmul.f32 %v1286_v41, %v979_v43 }
 0x35c   : > { %v981_v45 = vmul.f32 %v1284_v39, %v980_v44 }
 0x35e   : > { %982 = vst [vmem:[%s1593_s8] sm:$0xff] %v981_v45 }
 0x35f PF: > { %s23_s13 = sadd.s32 1, %s1293_s13  }
 0x360   : > { %p20_p7 = scmp.ge.s32.totalorder %s23_s13, 6  }
 0x362   :  { %22 = sbr.rel (!%p20_p7) target bundleno = 2 (0x2), region = 110 }

</bundles_post_ra>
